<compile_context>
chip_gen: v6e
topology: v6e:2x2x1
jax: 0.10.0
libtpu: 0.0.40
codegen_flags: <defaults>
</compile_context>

<pallas_src>
import jax
import jax.numpy as jnp
from jax.experimental import pallas as pl
from jax.experimental.pallas import tpu as pltpu

_LANE = 128
_WIDTH_CANDIDATES = (4096, 2048, 1024, 512, 256, 128)
_TARGET_BLOCK_BYTES = 4 * 1024 * 1024      # 4 live buffers (in+out, dbl-buffered) = 16 MiB
_VMEM_LIMIT_BYTES = 32 * 1024 * 1024       # explicit: covers v5e's 16 MiB scoped default
_MIN_BLOCKS_WHEN_LARGE = 8                 # >= 4 blocks per TC on v7x -> DMA/compute overlap
_LARGE_BYTES = 512 * 1024                  # only force extra splitting above this size


def _sublane_quantum(dtype):
    itemsize = jnp.dtype(dtype).itemsize
    if itemsize >= 4:
        return 8
    if itemsize == 2:
        return 16
    return 32


def _erf_gelu_kernel(x_ref, o_ref):
    xf = x_ref[...].astype(jnp.float32)            # erf core in f32 for accuracy
    inv_sqrt2 = jnp.float32(0.7071067811865475244)
    cdf = 0.5 * (1.0 + jax.lax.erf(xf * inv_sqrt2))
    o_ref[...] = (xf * cdf).astype(o_ref.dtype)


def _run_2d(x2d):
    """Lane-dense streaming pass over a (rows, width) view, width % 128 == 0."""
    rows, width = x2d.shape
    dtype = x2d.dtype
    itemsize = jnp.dtype(dtype).itemsize
    sub_q = _sublane_quantum(dtype)

    # Row tile targeting ~4 MiB per block buffer, rounded to the dtype's
    # sublane quantum so loads/stores stay unmasked.
    target_rows = max(
        sub_q, (_TARGET_BLOCK_BYTES // (width * itemsize)) // sub_q * sub_q
    )

    # Keep >= ~8 blocks for big tensors so both v7x TensorCores get several
    # blocks each and the pipeline can prefetch/write back under compute.
    total_bytes = rows * width * itemsize
    if total_bytes > _LARGE_BYTES and rows >= _MIN_BLOCKS_WHEN_LARGE * sub_q:
        cap = max(sub_q, (rows // _MIN_BLOCKS_WHEN_LARGE) // sub_q * sub_q)
        target_rows = min(target_rows, cap)

    # Either a sub_q multiple, or == rows (full dim) — both satisfy the
    # (8,128)-style block constraint; partial last block is masked by Pallas.
    tile_rows = min(rows, target_rows)
    grid = (pl.cdiv(rows, tile_rows),)

    return pl.pallas_call(
        _erf_gelu_kernel,
        out_shape=jax.ShapeDtypeStruct((rows, width), dtype),
        grid=grid,
        in_specs=[pl.BlockSpec((tile_rows, width), lambda i: (i, 0))],
        out_specs=pl.BlockSpec((tile_rows, width), lambda i: (i, 0)),
        compiler_params=pltpu.CompilerParams(
            dimension_semantics=("parallel",),
            vmem_limit_bytes=_VMEM_LIMIT_BYTES,
        ),
    )(x2d)


def _run_tiny(flat):
    """Single full-array block (< 128 elems): block == array dims, so the
    (8,128) divisibility rule does not apply."""
    m = flat.shape[0]
    out = pl.pallas_call(
        _erf_gelu_kernel,
        out_shape=jax.ShapeDtypeStruct((1, m), flat.dtype),
        grid=(1,),
        in_specs=[pl.BlockSpec((1, m), lambda i: (0, 0))],
        out_specs=pl.BlockSpec((1, m), lambda i: (0, 0)),
    )(flat.reshape(1, m))
    return out.reshape(-1)


def erf_gelu(x):
    orig_shape = x.shape
    n = x.size
    if n == 0:
        return x

    # --- Zero-copy fast path: flat size factors into (rows, W), W % 128 == 0.
    if n % _LANE == 0:
        width = next(w for w in _WIDTH_CANDIDATES if n % w == 0)
        out2d = _run_2d(jnp.ravel(x).reshape(n // width, width))
        return out2d.reshape(orig_shape)

    # --- Tiny tensor: single full-shape block.
    if n < _LANE:
        return _run_tiny(jnp.ravel(x)).reshape(orig_shape)

    # --- Rare general case (n not a multiple of 128): bulk through the
    # lane-dense kernel, < 128-element tail through the tiny kernel. Avoids
    # jnp.pad + bulk slice of the previous fallback.
    x_flat = jnp.ravel(x)
    n_main = (n // _LANE) * _LANE
    width = next(w for w in _WIDTH_CANDIDATES if n_main % w == 0)
    main = _run_2d(x_flat[:n_main].reshape(n_main // width, width)).reshape(-1)
    tail = _run_tiny(x_flat[n_main:])
    return jnp.concatenate([main, tail]).reshape(orig_shape)


def erf_gelu_ref(x):
    xf = x.astype(jnp.float32)
    return (xf * 0.5 * (1.0 + jax.lax.erf(xf / jnp.sqrt(2.0)))).astype(x.dtype)


if __name__ == "__main__":
    key = jax.random.PRNGKey(0)
    x = jax.random.normal(key, (2, 4, 16, 16), dtype=jnp.float32)  # NCHW-style input

    out = jax.block_until_ready(erf_gelu(x))
    ref = erf_gelu_ref(x)

    assert out.shape == x.shape and out.dtype == x.dtype
    assert jnp.allclose(out, ref, atol=1e-5, rtol=1e-5)

    print("KERNEL_OK")
</pallas_src>

<mosaic_0001>
module attributes {stable_mosaic.version = 11 : i64} {
  func.func @_erf_gelu_kernel(%arg0: i32, %arg1: memref<1x2048xf32, #tpu.memory_space<vmem>>, %arg2: memref<1x2048xf32, #tpu.memory_space<vmem>>) attributes {dimension_semantics = [#tpu.dimension_semantics<parallel>], iteration_bounds = array<i64: 1>, scalar_prefetch = 0 : i64, scratch_operands = 0 : i64, tpu.core_type = #tpu.core_type<tc>, window_params = [{transform_indices = @transform_0, window_bounds = array<i64: 1, 2048>}, {transform_indices = @transform_1, window_bounds = array<i64: 1, 2048>}]} {
    %c0 = arith.constant 0 : index
    %c0_0 = arith.constant 0 : index
    %0 = vector.load %arg1[%c0, %c0_0] : memref<1x2048xf32, #tpu.memory_space<vmem>>, vector<1x2048xf32>
    %cst = arith.constant 0.707106769 : f32
    %1 = vector.broadcast %cst : f32 to vector<1x2048xf32>
    %2 = arith.mulf %0, %1 : vector<1x2048xf32>
    %3 = math.erf %2 : vector<1x2048xf32>
    %cst_1 = arith.constant 1.000000e+00 : f32
    %4 = vector.broadcast %cst_1 : f32 to vector<1x2048xf32>
    %5 = arith.addf %4, %3 : vector<1x2048xf32>
    %cst_2 = arith.constant 5.000000e-01 : f32
    %6 = vector.broadcast %cst_2 : f32 to vector<1x2048xf32>
    %7 = arith.mulf %6, %5 : vector<1x2048xf32>
    %8 = arith.mulf %0, %7 : vector<1x2048xf32>
    %c0_3 = arith.constant 0 : index
    %c0_4 = arith.constant 0 : index
    %9 = vector.load %arg2[%c0_3, %c0_4] : memref<1x2048xf32, #tpu.memory_space<vmem>>, vector<1x2048xf32>
    tpu.vector_store %arg2[%c0_3, %c0_4], %8 {strides = array<i32>} : memref<1x2048xf32, #tpu.memory_space<vmem>>, vector<1x2048xf32>,
    return
  }
  func.func @transform_0(%arg0: i32) -> (i32, i32) {
    %c0_i32 = arith.constant 0 : i32
    %c0_i32_0 = arith.constant 0 : i32
    return %arg0, %c0_i32 : i32, i32
  }
  func.func @transform_1(%arg0: i32) -> (i32, i32) {
    %c0_i32 = arith.constant 0 : i32
    %c0_i32_0 = arith.constant 0 : i32
    return %arg0, %c0_i32 : i32, i32
  }
}

</mosaic_0001>

<bundles_post_ra>
// kernel: tpu_custom_call.1
= control target key start
LH: loop header
LB: loop body
LE: loop exit
PB: predicated region body
PF: predicated region fallthrough
CT: control target
= control target key end

     0   :  { %6 = vsyncpa [#allocation3], 0  ;;  %s118_s0 = inlined_call_operand.hbm [shape: f32[1,2048], index: 0, kind: input, shape index: {}]   ;;  %s119_s1 = inlined_call_operand.hbm [shape: f32[1,2048], index: 1, kind: output, shape index: {}]  }
   0x1   :  { %7 = vsyncpa [#allocation4], 0  ;;  %s100_s6 = smov [#allocation2]  }
   0x2   :  { %s14_s7 = sshll.u32 %s100_s6, 4  ;;  %s15_s7 = int_to_ptr.vmem [resolvable:$true] %s14_s7 }
   0x3   :  { %s64_s8 = scalar_lea.vmem %s15_s7, 256  ;;  %p69_p1 = scmp.lt.s32.totalorder %s15_s7, %s15_s7 }
   0x4   :  { %p65_p0 = scmp.ne.s32.totalorder %s15_s7, %s64_s8  ;;  %p70_p2 = scmp.lt.s32.totalorder %s64_s8, %s64_s8 }
   0x6   :  { %p71_p3 = por %p70_p2, %p69_p1 }
   0x8   :  { %p72_p4 = pnand %p71_p3, %p65_p0 }
   0xa   :  { %75 = shalt.err (!%p72_p4)
}
   0xb   :  { %17 = dma.hbm_to_vmem [thread:$0]  %s118_s0, 256, %s15_s7, [#allocation3]  }
   0xc   :  { %96 = dma.done.wait [#allocation3], 256  }
   0xd   :  { %97 = vsyncadd [#allocation3], 4294967040  ;;  %v21_v0 = vld [vmem:[#allocation2] sm:$0xff]  ;;  %v22_v1 = vld [vmem:[#allocation2 + $0x8] sm:$0xff]  ;;  %s101_s11 = smov [#allocation5]  }
   0xe   :  { %v23_v2 = vmul.f32 0.70710677, %v21_v0  ;;  %v24_v3 = vmul.f32 0.70710677, %v22_v1  ;;  %s41_s12 = sshll.u32 %s101_s11, 4  ;;  %s42_s12 = int_to_ptr.vmem [resolvable:$true] %s41_s12 }
   0xf   :  { %s76_s0 = scalar_lea.vmem %s42_s12, 256  ;;  %p81_p6 = scmp.lt.s32.totalorder %s42_s12, %s42_s12 }
  0x10   :  { %52 = verf.f32 %v23_v2  ;;  %p77_p5 = scmp.ne.s32.totalorder %s42_s12, %s76_s0  ;;  %p82_p7 = scmp.lt.s32.totalorder %s76_s0, %s76_s0 }
  0x11   :  { %54 = verf.f32 %v24_v3 }
  0x12   :  { %p83_p8 = por %p82_p7, %p81_p6 }
  0x14   :  { %p84_p9 = pnand %p83_p8, %p77_p5 }
  0x1d   :  { %v53_v4 = vpop.eup %52 }
  0x1e   :  { %v55_v5 = vpop.eup %54  ;;  %v27_v6 = vadd.f32 1.0, %v53_v4 }
  0x1f   :  { %v28_v7 = vadd.f32 1.0, %v55_v5 }
  0x20   :  { %v29_v8 = vmul.f32 0.5, %v27_v6 }
  0x21   :  { %v30_v9 = vmul.f32 0.5, %v28_v7 }
  0x22   :  { %v31_v10 = vmul.f32 %v29_v8, %v21_v0 }
  0x23   :  { %v32_v11 = vmul.f32 %v30_v9, %v22_v1 }
  0x24   :  { %33 = vst [vmem:[#allocation5] sm:$0xff] %v31_v10 }
  0x25   :  { %34 = vst [vmem:[#allocation5 + $0x8] sm:$0xff] %v32_v11 }
  0x26   :  { %87 = shalt.err (!%p84_p9)
}
  0x27   :  { %44 = dma.vmem_to_hbm [thread:$0]  %s42_s12, 256, %s119_s1, [#allocation4]  }
  0x28   :  { %98 = dma.done.wait [#allocation4], 256  }
  0x29   :  { %99 = vsyncadd [#allocation4], 4294967040 }
  0x2a   :  { %48 = vsyncpa [#allocation3], 1 }
  0x2b   :  { %49 = vsyncpa [#allocation4], 1 }

</bundles_post_ra>
